<compile_context>
chip_gen: v7x
topology: tpu7x:2x2x1
jax: 0.10.0
libtpu: 0.0.40
codegen_flags: <defaults>
</compile_context>

<pallas_src>
import functools

import jax
import jax.numpy as jnp
from jax.experimental import pallas as pl
from jax.experimental.pallas import tpu as pltpu


def _instance_loss_kernel(zr_ref, zc_ref, out_ref, m_sc, l_sc, pos_sc,
                          *, inv_temp, tiles_per_half):
    i = pl.program_id(0)                  # row tile
    k = pl.program_id(1)                  # column tile (reduction axis)
    nk = pl.num_programs(1)
    t = zr_ref.shape[0]

    @pl.when(k == 0)
    def _():
        m_sc[...] = jnp.full_like(m_sc, -1e30)
        l_sc[...] = jnp.zeros_like(l_sc)
        pos_sc[...] = jnp.zeros_like(pos_sc)

    # (T, D) x (T, D) contracting the feature dim of both operands: no
    # transpose is formed, operands keep their input dtype, f32 accumulation.
    s = jax.lax.dot_general(
        zr_ref[...], zc_ref[...],
        dimension_numbers=(((1,), (1,)), ((), ())),
        preferred_element_type=jnp.float32,
    ) * inv_temp                                         # (T, T) f32

    # Column tile holding the positive partners of this row tile. Since
    # T | batch_size, positives sit exactly on the local diagonal there.
    k_pos = (i + tiles_per_half) % nk

    @pl.when(k == k_pos)
    def _():
        lr = jax.lax.broadcasted_iota(jnp.int32, (t, t), 0)
        lc = jax.lax.broadcasted_iota(jnp.int32, (t, t), 1)
        pos_sc[...] = jnp.sum(jnp.where(lr == lc, s, 0.0), axis=1,
                              keepdims=True)

    def online_update(scores):
        m_prev = m_sc[...]
        m_new = jnp.maximum(m_prev, jnp.max(scores, axis=1, keepdims=True))
        l_sc[...] = (l_sc[...] * jnp.exp(m_prev - m_new)
                     + jnp.sum(jnp.exp(scores - m_new), axis=1, keepdims=True))
        m_sc[...] = m_new

    # Self-similarity diagonal lives only in column tile k == i: mask it there,
    # plain update everywhere else (mask construction is runtime-skipped on
    # all other column steps).
    @pl.when(k == i)
    def _():
        lr = jax.lax.broadcasted_iota(jnp.int32, (t, t), 0)
        lc = jax.lax.broadcasted_iota(jnp.int32, (t, t), 1)
        online_update(jnp.where(lr == lc, jnp.float32(-1e30), s))

    @pl.when(k != i)
    def _():
        online_update(s)

    @pl.when(k == nk - 1)
    def _():
        loss_rows = m_sc[...] + jnp.log(l_sc[...]) - pos_sc[...]   # (T, 1)
        out_ref[...] = jnp.full(out_ref.shape, jnp.sum(loss_rows),
                                dtype=jnp.float32)


def instance_loss(z_i, z_j, temperature):
    """JAX/Pallas equivalent of InstanceLoss(batch_size, temperature).forward."""
    assert z_i.shape == z_j.shape and z_i.ndim == 2
    b, d = z_i.shape
    n = 2 * b

    # Tile size: largest of these that divides the batch (keeps the diagonal /
    # positive entries tile-aligned). Sized so the (T, T) sim tile + z tiles
    # stay far under v7x's 64 MiB VMEM even after double-buffering.
    t = None
    for cand in (256, 128, 64, 32, 16, 8):
        if b % cand == 0:
            t = cand
            break
    # TODO(synk): batch sizes that are not a multiple of 8 would need row
    # padding + masking of the padded rows; not handled here.
    assert t is not None, "batch_size must be a multiple of 8"

    n_tiles = n // t
    tiles_per_half = b // t

    # Concatenate the two views (row order identical to the PyTorch module).
    z = jnp.concatenate([z_i, z_j], axis=0)          # (N, D)

    kernel = functools.partial(
        _instance_loss_kernel,
        inv_temp=float(1.0 / temperature),
        tiles_per_half=tiles_per_half,
    )

    partial = pl.pallas_call(
        kernel,
        out_shape=jax.ShapeDtypeStruct((n_tiles, 8, 128), jnp.float32),
        grid_spec=pltpu.PrefetchScalarGridSpec(
            num_scalar_prefetch=0,
            grid=(n_tiles, n_tiles),
            in_specs=[
                pl.BlockSpec((t, d), lambda i, k: (i, 0)),   # row block of z
                pl.BlockSpec((t, d), lambda i, k: (k, 0)),   # col block of z
            ],
            out_specs=pl.BlockSpec((1, 8, 128), lambda i, k: (i, 0, 0)),
            scratch_shapes=[
                pltpu.VMEM((t, 1), jnp.float32),   # running max m
                pltpu.VMEM((t, 1), jnp.float32),   # running sum-exp l
                pltpu.VMEM((t, 1), jnp.float32),   # positive logit per row
            ],
        ),
        compiler_params=pltpu.CompilerParams(
            dimension_semantics=("parallel", "arbitrary"),
        ),
    )(z, z)   # two tiled views (row blocks / column blocks) of the same array

    return jnp.sum(partial[:, 0, 0]) / jnp.float32(n)


def _reference_loss(z_i, z_j, temperature):
    # Pure-JAX reference mirroring the PyTorch code path (for sanity check).
    b = z_i.shape[0]
    n = 2 * b
    z = jnp.concatenate([z_i, z_j], axis=0).astype(jnp.float32)
    sim = (z @ z.T) / temperature
    sim_i_j = jnp.diagonal(sim, offset=b)
    sim_j_i = jnp.diagonal(sim, offset=-b)
    positive = jnp.concatenate([sim_i_j, sim_j_i]).reshape(n, 1)
    mask = jnp.ones((n, n), dtype=bool)
    mask = mask.at[jnp.arange(n), jnp.arange(n)].set(False)
    mask = mask.at[jnp.arange(b), jnp.arange(b) + b].set(False)
    mask = mask.at[jnp.arange(b) + b, jnp.arange(b)].set(False)
    negative = sim[mask].reshape(n, -1)
    logits = jnp.concatenate([positive, negative], axis=1)
    lse = jax.scipy.special.logsumexp(logits, axis=1)
    loss = jnp.sum(lse - logits[:, 0]) / n
    return loss


if __name__ == "__main__":
    batch_size = 8
    hidden = 32
    temperature = 0.5

    key = jax.random.PRNGKey(0)
    k1, k2 = jax.random.split(key)
    z_i = jax.random.normal(k1, (batch_size, hidden), dtype=jnp.float32)
    z_j = jax.random.normal(k2, (batch_size, hidden), dtype=jnp.float32)

    loss = instance_loss(z_i, z_j, temperature)
    loss = jax.block_until_ready(loss)

    ref = _reference_loss(z_i, z_j, temperature)
    assert jnp.allclose(loss, ref, rtol=1e-5, atol=1e-5), (loss, ref)

    print("KERNEL_OK")
</pallas_src>

<mosaic_0001>
module attributes {stable_mosaic.version = 11 : i64} {
  func.func @_instance_loss_kernel(%arg0: i32, %arg1: i32, %arg2: memref<8x32xf32, #tpu.memory_space<vmem>>, %arg3: memref<8x32xf32, #tpu.memory_space<vmem>>, %arg4: memref<1x8x128xf32, #tpu.memory_space<vmem>>, %arg5: memref<8x1xf32, #tpu.memory_space<vmem>>, %arg6: memref<8x1xf32, #tpu.memory_space<vmem>>, %arg7: memref<8x1xf32, #tpu.memory_space<vmem>>) attributes {dimension_semantics = [#tpu.dimension_semantics<parallel>, #tpu.dimension_semantics<arbitrary>], iteration_bounds = array<i64: 2, 2>, scalar_prefetch = 0 : i64, scratch_operands = 3 : i64, tpu.core_type = #tpu.core_type<tc>, window_params = [{transform_indices = @transform_0, window_bounds = array<i64: 8, 32>}, {transform_indices = @transform_1, window_bounds = array<i64: 8, 32>}, {transform_indices = @transform_2, window_bounds = array<i64: 1, 8, 128>}]} {
    %c0_i32 = arith.constant 0 : i32
    %0 = arith.cmpi eq, %arg1, %c0_i32 : i32
    %1 = arith.extui %0 : i1 to i32
    %c0_i32_0 = arith.constant 0 : i32
    %2 = arith.cmpi ne, %1, %c0_i32_0 : i32
    scf.if %2 {
      %cst_15 = arith.constant -1.000000e+30 : f32
      %31 = vector.broadcast %cst_15 : f32 to vector<8x1xf32>
      %c0_16 = arith.constant 0 : index
      %c0_17 = arith.constant 0 : index
      %32 = vector.load %arg5[%c0_16, %c0_17] : memref<8x1xf32, #tpu.memory_space<vmem>>, vector<8x1xf32>
      tpu.vector_store %arg5[%c0_16, %c0_17], %31 {strides = array<i32>} : memref<8x1xf32, #tpu.memory_space<vmem>>, vector<8x1xf32>,
      %cst_18 = arith.constant 0.000000e+00 : f32
      %33 = vector.broadcast %cst_18 : f32 to vector<8x1xf32>
      %c0_19 = arith.constant 0 : index
      %c0_20 = arith.constant 0 : index
      %34 = vector.load %arg6[%c0_19, %c0_20] : memref<8x1xf32, #tpu.memory_space<vmem>>, vector<8x1xf32>
      tpu.vector_store %arg6[%c0_19, %c0_20], %33 {strides = array<i32>} : memref<8x1xf32, #tpu.memory_space<vmem>>, vector<8x1xf32>,
      %cst_21 = arith.constant 0.000000e+00 : f32
      %35 = vector.broadcast %cst_21 : f32 to vector<8x1xf32>
      %c0_22 = arith.constant 0 : index
      %c0_23 = arith.constant 0 : index
      %36 = vector.load %arg7[%c0_22, %c0_23] : memref<8x1xf32, #tpu.memory_space<vmem>>, vector<8x1xf32>
      tpu.vector_store %arg7[%c0_22, %c0_23], %35 {strides = array<i32>} : memref<8x1xf32, #tpu.memory_space<vmem>>, vector<8x1xf32>,
    } else {
    }
    %c0 = arith.constant 0 : index
    %c0_1 = arith.constant 0 : index
    %3 = vector.load %arg2[%c0, %c0_1] : memref<8x32xf32, #tpu.memory_space<vmem>>, vector<8x32xf32>
    %c0_2 = arith.constant 0 : index
    %c0_3 = arith.constant 0 : index
    %4 = vector.load %arg3[%c0_2, %c0_3] : memref<8x32xf32, #tpu.memory_space<vmem>>, vector<8x32xf32>
    %cst = arith.constant dense<0.000000e+00> : vector<8x8xf32>
    %5 = tpu.matmul %3, %4, %cst {dimension_numbers = #tpu.dot_dimension_numbers<[1], [1], [0], [0], [0, 0, 1, 0], [], []>} : vector<8x32xf32>, vector<8x32xf32>, vector<8x8xf32> -> vector<8x8xf32>
    %cst_4 = arith.constant 2.000000e+00 : f32
    %6 = vector.broadcast %cst_4 : f32 to vector<8x8xf32>
    %7 = arith.mulf %5, %6 : vector<8x8xf32>
    %c1_i32 = arith.constant 1 : i32
    %8 = arith.addi %arg0, %c1_i32 : i32
    %c2_i32 = arith.constant 2 : i32
    %c0_i32_5 = arith.constant 0 : i32
    %9 = arith.cmpi eq, %c2_i32, %c0_i32_5 : i32
    %c1_i32_6 = arith.constant 1 : i32
    %10 = arith.select %9, %c1_i32_6, %c2_i32 : i32
    %11 = arith.remsi %8, %10 : i32
    %c0_i32_7 = arith.constant 0 : i32
    %12 = arith.cmpi ne, %11, %c0_i32_7 : i32
    %c0_i32_8 = arith.constant 0 : i32
    %13 = arith.cmpi slt, %11, %c0_i32_8 : i32
    %c0_i32_9 = arith.constant 0 : i32
    %14 = arith.cmpi slt, %10, %c0_i32_9 : i32
    %15 = arith.xori %13, %14 : i1
    %16 = arith.andi %15, %12 : i1
    %17 = arith.addi %11, %10 : i32
    %18 = arith.select %16, %17, %11 : i32
    %19 = arith.cmpi eq, %arg1, %18 : i32
    %20 = arith.extui %19 : i1 to i32
    %c0_i32_10 = arith.constant 0 : i32
    %21 = arith.cmpi ne, %20, %c0_i32_10 : i32
    scf.if %21 {
      %31 = tpu.iota {dimensions = array<i32: 0>} : vector<8x8xi32>
      %32 = tpu.iota {dimensions = array<i32: 1>} : vector<8x8xi32>
      %33 = arith.cmpi eq, %31, %32 : vector<8x8xi32>
      %cst_15 = arith.constant 0.000000e+00 : f32
      %34 = vector.broadcast %cst_15 : f32 to vector<8x8xf32>
      %35 = arith.select %33, %7, %34 : vector<8x8xi1>, vector<8x8xf32>
      %cst_16 = arith.constant dense<0.000000e+00> : vector<8xf32>
      %36 = vector.multi_reduction <add>, %35, %cst_16 [1] : vector<8x8xf32> to vector<8xf32>
      %37 = vector.shape_cast %36 : vector<8xf32> to vector<8x1xf32>
      %c0_17 = arith.constant 0 : index
      %c0_18 = arith.constant 0 : index
      %38 = vector.load %arg7[%c0_17, %c0_18] : memref<8x1xf32, #tpu.memory_space<vmem>>, vector<8x1xf32>
      tpu.vector_store %arg7[%c0_17, %c0_18], %37 {strides = array<i32>} : memref<8x1xf32, #tpu.memory_space<vmem>>, vector<8x1xf32>,
    } else {
    }
    %22 = arith.cmpi eq, %arg1, %arg0 : i32
    %23 = arith.extui %22 : i1 to i32
    %c0_i32_11 = arith.constant 0 : i32
    %24 = arith.cmpi ne, %23, %c0_i32_11 : i32
    scf.if %24 {
      %31 = tpu.iota {dimensions = array<i32: 0>} : vector<8x8xi32>
      %32 = tpu.iota {dimensions = array<i32: 1>} : vector<8x8xi32>
      %33 = arith.cmpi eq, %31, %32 : vector<8x8xi32>
      %cst_15 = arith.constant -1.000000e+30 : f32
      %34 = vector.broadcast %cst_15 : f32 to vector<8x8xf32>
      %35 = arith.select %33, %34, %7 : vector<8x8xi1>, vector<8x8xf32>
      %c0_16 = arith.constant 0 : index
      %c0_17 = arith.constant 0 : index
      %36 = vector.load %arg5[%c0_16, %c0_17] : memref<8x1xf32, #tpu.memory_space<vmem>>, vector<8x1xf32>
      %cst_18 = arith.constant dense<0xFF800000> : vector<8xf32>
      %37 = vector.multi_reduction <maximumf>, %35, %cst_18 [1] : vector<8x8xf32> to vector<8xf32>
      %38 = vector.shape_cast %37 : vector<8xf32> to vector<8x1xf32>
      %39 = arith.maximumf %36, %38 : vector<8x1xf32>
      %c0_19 = arith.constant 0 : index
      %c0_20 = arith.constant 0 : index
      %40 = vector.load %arg6[%c0_19, %c0_20] : memref<8x1xf32, #tpu.memory_space<vmem>>, vector<8x1xf32>
      %41 = arith.subf %36, %39 : vector<8x1xf32>
      %42 = math.exp %41 : vector<8x1xf32>
      %43 = arith.mulf %40, %42 : vector<8x1xf32>
      %44 = vector.broadcast %39 : vector<8x1xf32> to vector<8x8xf32>
      %45 = arith.subf %35, %44 : vector<8x8xf32>
      %46 = math.exp %45 : vector<8x8xf32>
      %cst_21 = arith.constant dense<0.000000e+00> : vector<8xf32>
      %47 = vector.multi_reduction <add>, %46, %cst_21 [1] : vector<8x8xf32> to vector<8xf32>
      %48 = vector.shape_cast %47 : vector<8xf32> to vector<8x1xf32>
      %49 = arith.addf %43, %48 : vector<8x1xf32>
      %c0_22 = arith.constant 0 : index
      %c0_23 = arith.constant 0 : index
      %50 = vector.load %arg6[%c0_22, %c0_23] : memref<8x1xf32, #tpu.memory_space<vmem>>, vector<8x1xf32>
      tpu.vector_store %arg6[%c0_22, %c0_23], %49 {strides = array<i32>} : memref<8x1xf32, #tpu.memory_space<vmem>>, vector<8x1xf32>,
      %c0_24 = arith.constant 0 : index
      %c0_25 = arith.constant 0 : index
      %51 = vector.load %arg5[%c0_24, %c0_25] : memref<8x1xf32, #tpu.memory_space<vmem>>, vector<8x1xf32>
      tpu.vector_store %arg5[%c0_24, %c0_25], %39 {strides = array<i32>} : memref<8x1xf32, #tpu.memory_space<vmem>>, vector<8x1xf32>,
    } else {
    }
    %25 = arith.cmpi ne, %arg1, %arg0 : i32
    %26 = arith.extui %25 : i1 to i32
    %c0_i32_12 = arith.constant 0 : i32
    %27 = arith.cmpi ne, %26, %c0_i32_12 : i32
    scf.if %27 {
      %c0_15 = arith.constant 0 : index
      %c0_16 = arith.constant 0 : index
      %31 = vector.load %arg5[%c0_15, %c0_16] : memref<8x1xf32, #tpu.memory_space<vmem>>, vector<8x1xf32>
      %cst_17 = arith.constant dense<0xFF800000> : vector<8xf32>
      %32 = vector.multi_reduction <maximumf>, %7, %cst_17 [1] : vector<8x8xf32> to vector<8xf32>
      %33 = vector.shape_cast %32 : vector<8xf32> to vector<8x1xf32>
      %34 = arith.maximumf %31, %33 : vector<8x1xf32>
      %c0_18 = arith.constant 0 : index
      %c0_19 = arith.constant 0 : index
      %35 = vector.load %arg6[%c0_18, %c0_19] : memref<8x1xf32, #tpu.memory_space<vmem>>, vector<8x1xf32>
      %36 = arith.subf %31, %34 : vector<8x1xf32>
      %37 = math.exp %36 : vector<8x1xf32>
      %38 = arith.mulf %35, %37 : vector<8x1xf32>
      %39 = vector.broadcast %34 : vector<8x1xf32> to vector<8x8xf32>
      %40 = arith.subf %7, %39 : vector<8x8xf32>
      %41 = math.exp %40 : vector<8x8xf32>
      %cst_20 = arith.constant dense<0.000000e+00> : vector<8xf32>
      %42 = vector.multi_reduction <add>, %41, %cst_20 [1] : vector<8x8xf32> to vector<8xf32>
      %43 = vector.shape_cast %42 : vector<8xf32> to vector<8x1xf32>
      %44 = arith.addf %38, %43 : vector<8x1xf32>
      %c0_21 = arith.constant 0 : index
      %c0_22 = arith.constant 0 : index
      %45 = vector.load %arg6[%c0_21, %c0_22] : memref<8x1xf32, #tpu.memory_space<vmem>>, vector<8x1xf32>
      tpu.vector_store %arg6[%c0_21, %c0_22], %44 {strides = array<i32>} : memref<8x1xf32, #tpu.memory_space<vmem>>, vector<8x1xf32>,
      %c0_23 = arith.constant 0 : index
      %c0_24 = arith.constant 0 : index
      %46 = vector.load %arg5[%c0_23, %c0_24] : memref<8x1xf32, #tpu.memory_space<vmem>>, vector<8x1xf32>
      tpu.vector_store %arg5[%c0_23, %c0_24], %34 {strides = array<i32>} : memref<8x1xf32, #tpu.memory_space<vmem>>, vector<8x1xf32>,
    } else {
    }
    %c1_i32_13 = arith.constant 1 : i32
    %28 = arith.cmpi eq, %arg1, %c1_i32_13 : i32
    %29 = arith.extui %28 : i1 to i32
    %c0_i32_14 = arith.constant 0 : i32
    %30 = arith.cmpi ne, %29, %c0_i32_14 : i32
    scf.if %30 {
      %c0_15 = arith.constant 0 : index
      %c0_16 = arith.constant 0 : index
      %31 = vector.load %arg5[%c0_15, %c0_16] : memref<8x1xf32, #tpu.memory_space<vmem>>, vector<8x1xf32>
      %c0_17 = arith.constant 0 : index
      %c0_18 = arith.constant 0 : index
      %32 = vector.load %arg6[%c0_17, %c0_18] : memref<8x1xf32, #tpu.memory_space<vmem>>, vector<8x1xf32>
      %33 = math.log %32 : vector<8x1xf32>
      %34 = arith.addf %31, %33 : vector<8x1xf32>
      %c0_19 = arith.constant 0 : index
      %c0_20 = arith.constant 0 : index
      %35 = vector.load %arg7[%c0_19, %c0_20] : memref<8x1xf32, #tpu.memory_space<vmem>>, vector<8x1xf32>
      %36 = arith.subf %34, %35 : vector<8x1xf32>
      %37 = vector.shape_cast %36 : vector<8x1xf32> to vector<1x8x1xf32>
      %cst_21 = arith.constant dense<0.000000e+00> : vector<1xf32>
      %38 = vector.multi_reduction <add>, %37, %cst_21 [1, 2] : vector<1x8x1xf32> to vector<1xf32>
      %39 = vector.shape_cast %38 : vector<1xf32> to vector<1x1x1xf32>
      %40 = vector.extract %39[0, 0, 0] : f32 from vector<1x1x1xf32>
      %41 = vector.broadcast %40 : f32 to vector<1x8x128xf32>
      %c0_22 = arith.constant 0 : index
      %c0_23 = arith.constant 0 : index
      %c0_24 = arith.constant 0 : index
      %42 = vector.load %arg4[%c0_22, %c0_23, %c0_24] : memref<1x8x128xf32, #tpu.memory_space<vmem>>, vector<1x8x128xf32>
      tpu.vector_store %arg4[%c0_22, %c0_23, %c0_24], %41 {strides = array<i32>} : memref<1x8x128xf32, #tpu.memory_space<vmem>>, vector<1x8x128xf32>,
    } else {
    }
    return
  }
  func.func @transform_0(%arg0: i32, %arg1: i32) -> (i32, i32) {
    %c0_i32 = arith.constant 0 : i32
    %c0_i32_0 = arith.constant 0 : i32
    return %arg0, %c0_i32 : i32, i32
  }
  func.func @transform_1(%arg0: i32, %arg1: i32) -> (i32, i32) {
    %c0_i32 = arith.constant 0 : i32
    %c0_i32_0 = arith.constant 0 : i32
    return %arg1, %c0_i32 : i32, i32
  }
  func.func @transform_2(%arg0: i32, %arg1: i32) -> (i32, i32, i32) {
    %c0_i32 = arith.constant 0 : i32
    %c0_i32_0 = arith.constant 0 : i32
    %c0_i32_1 = arith.constant 0 : i32
    return %arg0, %c0_i32, %c0_i32_0 : i32, i32, i32
  }
}

</mosaic_0001>

<bundles_post_ra>
// kernel: tpu_custom_call.1
= control target key start
LH: loop header
LB: loop body
LE: loop exit
PB: predicated region body
PF: predicated region fallthrough
CT: control target
= control target key end

     0   :  { %s1228_s0 = inlined_call_operand.hbm [shape: f32[16,32], index: 0, kind: input, shape index: {}]   ;;  %s1229_s1 = inlined_call_operand.hbm [shape: f32[16,32], index: 1, kind: input, shape index: {}]   ;;  %s1230_s2 = inlined_call_operand.hbm [shape: f32[2,8,128], index: 2, kind: output, shape index: {}]  }
   0x1   :  { %1238 = sst [smem:[#allocation16_spill]] %s1228_s0 }
   0x2   :  { %7 = vsyncpa [#allocation6], 0 }
   0x3   :  { %9 = vsyncpa [#allocation6 + $0x1], 0 }
   0x4   :  { %10 = vsyncpa [#allocation9], 0 }
   0x5   :  { %12 = vsyncpa [#allocation9 + $0x1], 0 }
   0x6   :  { %13 = vsyncpa [#allocation7], 0 }
   0x7   :  { %15 = vsyncpa [#allocation7 + $0x1], 0  ;;  %s905_s9 = smov 0   ;;  %s907_s10 = smov 0  }
   0x8   :  { %s909_s11 = smov 0   ;;  %s911_s12 = smov 0  }
   0x9   :  { %s913_s13 = smov 0   ;;  %s915_s14 = smov 0  }
   0xa   :  { %s917_s15 = smov 0   ;;  %s919_s16 = smov 0  }
   0xb   :  { %s921_s17 = smov 0   ;;  %s923_s18 = smov 0  }
   0xc   :  { %s925_s19 = smov 0  }
   0xd LB: > { %s533_s20 = sadd.s32 4294967295, %s879_s19   ;;  %s534_s21 = sadd.s32 4294967294, %s879_s19   ;;  %s879_s19 = sphi %s925_s19, %s21_s19   ;;  %s875_s18 = sphi %s923_s18, %s1271_s18   ;;  %s871_s17 = sphi %s921_s17, %s1270_s17   ;;  %s867_s16 = sphi %s919_s16, %s1269_s16   ;;  %s863_s15 = sphi %s917_s15, %s1268_s15   ;;  %s859_s14 = sphi %s915_s14, %s1267_s14   ;;  %s855_s13 = sphi %s913_s13, %s1266_s13   ;;  %s851_s12 = sphi %s911_s12, %s1265_s12   ;;  %s847_s11 = sphi %s909_s11, %s1264_s11   ;;  %s843_s10 = sphi %s907_s10, %s1263_s10   ;;  %s839_s9 = sphi %s905_s9, %s1262_s9  }
   0xe   : > { %s33_s22 = sadd.s32 1, %s875_s18  ;;  %s40_s23 = sadd.s32 1, %s859_s14 }
   0xf   : > { %p47_p0 = scmp.ne.s32.totalorder %s859_s14, %s855_s13  ;;  %p1232_p1 = scmp.eq.s32.totalorder %s879_s19, 0 }
  0x10   : > { %p53_p2 = scmp.ne.s32.totalorder %s855_s13, %s851_s12  ;;  %p969_p3 = scmp.eq.s32.totalorder %s533_s20, 0 }
  0x11   : > { %p975_p4 = por %p1232_p1, %p47_p0  ;;  %p103_p5 = scmp.eq.s32.totalorder %s533_s20, 3 }
  0x12   : > { %p981_p6 = por %p969_p3, %p53_p2  ;;  %p109_p7 = scmp.eq.s32.totalorder %s534_s21, 3 }
  0x13   : > { %p985_p8 = por %p103_p5, %p47_p0  ;;  %p1231_p10 = scmp.lt.s32.totalorder %s879_s19, 4 }
  0x14   : > { %s1241_s26 = scalar_select %p981_p6, 1, 0 }
  0x15   : > { %s1242_s27 = scalar_select %p985_p8, 1, 0 }
  0x16   : > { %p989_p9 = por %p109_p7, %p53_p2  ;;  %s129_s29 = sand.u32 1, %s859_s14  }
  0x17   : > { %s538_s30 = sshll.u32 %s875_s18, 7  ;;  %s537_s3 = sshll.u32 %s129_s29, 3 }
  0x18   : > { %s1243_s28 = scalar_select %p989_p9, 1, 0 }
  0x19   : > { %s1245_s0 = sld [smem:[#allocation16_spill]]  ;;  %s133_s7 = scalar_lea.vmem [#allocation5], %s537_s3 }
  0x1a   : > { %1244 = sst [smem:[#allocation14_spill]] %s1243_s28  ;;  %s140_s8 = sshll.u32 %s133_s7, 4  ;;  %s1009_s8 = int_to_ptr.vmem [resolvable:$true] %s140_s8 }
  0x1b   : > { %p1005_p11 = pnand %p1231_p10, %p975_p4  ;;  %s130_s21 = scalar_lea.sflag [#allocation6], %s129_s29 }
  0x1d   : > { %p695_p2 = pneg %p1005_p11 }
  0x1f   : > { %s999_s6 = scalar_lea.hbm %s1245_s0, %s538_s30  ;;  %s698_s4 = scalar_lea.hbm %s1245_s0, 256 }
  0x20   : > { %s693_s30 = scalar_lea.hbm %s999_s6, 128  ;;  %p699_p4 = scmp.lt.u32.totalorder %s999_s6, %s1245_s0 }
  0x21   : > { %p694_p0 = scmp.ne.s32.totalorder %s999_s6, %s693_s30  ;;  %p700_p10 = scmp.lt.u32.totalorder %s698_s4, %s693_s30 }
  0x22   : > { %p702_p12 = scmp.lt.u32.totalorder %s693_s30, %s999_s6 }
  0x23   : > { %p696_p5 = pnand %p695_p2, %p694_p0  ;;  %p701_p1 = por %p700_p10, %p699_p4 }
  0x25   : > { %p697_p7 = pneg %p696_p5  ;;  %p703_p13 = por %p702_p12, %p701_p1 }
  0x27   : > { %p704_p9 = pnand %p703_p13, %p697_p7 }
  0x29   : > { %707 = shalt.err (!%p704_p9)
}
  0x2a   : > { %s708_s29 = scalar_lea.vmem %s1009_s8, 128  ;;  %s881_s25 = smov [#allocation5]  }
  0x2b   : > { %p709_p0 = scmp.ne.s32.totalorder %s1009_s8, %s708_s29  ;;  %s713_s3 = sshll.u32 %s881_s25, 4  ;;  %s714_s3 = int_to_ptr.vmem [resolvable:$false] %s713_s3 }
  0x2c   : > { %s715_s5 = scalar_lea.vmem %s714_s3, 256  ;;  %p716_p6 = scmp.lt.s32.totalorder %s1009_s8, %s714_s3 }
  0x2d   : > { %p711_p5 = pnand %p709_p0, %p695_p2  ;;  %p717_p10 = scmp.lt.s32.totalorder %s715_s5, %s708_s29 }
  0x2f   : > { %p712_p8 = pneg %p711_p5  ;;  %p718_p4 = por %p717_p10, %p716_p6 }
  0x31   : > { %p719_p1 = pnand %p718_p4, %p712_p8 }
  0x33   : > { %722 = shalt.err (!%p719_p1)
}
  0x34   : > { %577 = dma.hbm_to_vmem [thread:$0]  (!%p1005_p11), %s999_s6, 128, %s1009_s8, %s130_s21  }
  0x35   : > { %p1247_p6 = scmp.lt.s32.totalorder %s879_s19, 5  ;;  %p1248_p8 = scmp.ge.s32.totalorder %s879_s19, 1 }
  0x36   : > { %s30_s30 = sadd.s32 1, %s871_s17  ;;  %s66_s4 = sadd.s32 1, %s847_s11 }
  0x37   : > { %p1042_p9 = pnand %p1248_p8, %p1247_p6  ;;  %p31_p12 = scmp.ge.s32.totalorder %s30_s30, 2 }
  0x38   : > { %p73_p13 = scmp.ne.s32.totalorder %s847_s11, %s843_s10  ;;  %p79_p2 = scmp.ne.s32.totalorder %s843_s10, %s839_s9 }
  0x39   : > { %s1273_s30 = smov (%p31_p12, %s30_s30), 0  ;;  %s1275_s22 = smov (!%p31_p12, %s33_s22), %s875_s18 }
  0x3a   : > { %1250 = sst [smem:[#allocation15_spill]] %s1273_s30  ;;  %s63_s6 = ssub.s32 %s871_s17, %s1273_s30 }
  0x3b   : > { %p1251_p11 = scmp.eq.s32.totalorder %s879_s19, 0  ;;  %p35_p0 = scmp.ge.s32.totalorder %s1275_s22, 2 }
  0x3c   : > { %p64_p5 = scmp.eq.s32.totalorder %s63_s6, 0  ;;  %p1067_p10 = por %p79_p2, %p969_p3 }
  0x3d   : > { %p1061_p7 = por %p73_p13, %p1251_p11  ;;  %s147_s9 = sand.u32 1, %s847_s11  }
  0x3e   : > { %s1253_s21 = scalar_select %p1067_p10, 1, 0 }
  0x3f   : > { %s1277_s22 = smov (%p35_p0, %s1275_s22), 0  ;;  %s539_s25 = sshll.u32 %s147_s9, 3 }
  0x40   : > { %s1075_s7 = scalar_select %p64_p5, %s847_s11, %s66_s4  }
  0x41   : > { %s37_s29 = ssub.s32 %s875_s18, %s1277_s22  ;;  %s540_s3 = sshll.u32 %s871_s17, 7 }
  0x42   : > { %p38_p4 = scmp.eq.s32.totalorder %s37_s29, 0  ;;  %s1088_s24 = scalar_lea.hbm %s1229_s1, %s540_s3 }
  0x43   : > { %s151_s30 = scalar_lea.vmem [#allocation8], %s539_s25  ;;  %p1254_p3 = scmp.lt.s32.totalorder %s879_s19, 4 }
  0x44   : > { %s1083_s5 = scalar_select %p38_p4, %s859_s14, %s40_s23  }
  0x45   : > { %s158_s28 = sshll.u32 %s151_s30, 4  ;;  %p1096_p1 = pnand %p1254_p3, %p1061_p7  ;;  %s1090_s28 = int_to_ptr.vmem [resolvable:$true] %s158_s28 }
  0x46   : > { %s148_s23 = scalar_lea.sflag [#allocation9], %s147_s9  ;;  %s723_s0 = scalar_lea.hbm %s1088_s24, 128 }
  0x47   : > { %p724_p6 = scmp.ne.s32.totalorder %s1088_s24, %s723_s0  ;;  %p725_p8 = pneg %p1096_p1 }
  0x48   : > { %s728_s8 = scalar_lea.hbm %s1229_s1, 256  ;;  %p729_p2 = scmp.lt.u32.totalorder %s1088_s24, %s1229_s1 }
  0x49   : > { %p726_p12 = pnand %p725_p8, %p724_p6  ;;  %p730_p11 = scmp.lt.u32.totalorder %s728_s8, %s723_s0 }
  0x4a   : > { %p732_p0 = scmp.lt.u32.totalorder %s723_s0, %s1088_s24 }
  0x4b   : > { %p727_p13 = pneg %p726_p12  ;;  %p731_p7 = por %p730_p11, %p729_p2 }
  0x4d   : > { %p733_p5 = por %p732_p0, %p731_p7 }
  0x4f   : > { %p734_p4 = pnand %p733_p5, %p727_p13 }
  0x51   : > { %737 = shalt.err (!%p734_p4)
}
  0x52   : > { %s738_s9 = scalar_lea.vmem %s1090_s28, 128  ;;  %s882_s6 = smov [#allocation8]  }
  0x53   : > { %p739_p3 = scmp.ne.s32.totalorder %s1090_s28, %s738_s9  ;;  %s743_s30 = sshll.u32 %s882_s6, 4  ;;  %s744_s30 = int_to_ptr.vmem [resolvable:$false] %s743_s30 }
  0x54   : > { %s745_s29 = scalar_lea.vmem %s744_s30, 256  ;;  %p746_p10 = scmp.lt.s32.totalorder %s1090_s28, %s744_s30 }
  0x55   : > { %p741_p6 = pnand %p739_p3, %p725_p8  ;;  %p747_p2 = scmp.lt.s32.totalorder %s745_s29, %s738_s9 }
  0x57   : > { %p742_p12 = pneg %p741_p6  ;;  %p748_p11 = por %p747_p2, %p746_p10 }
  0x59   : > { %p749_p7 = pnand %p748_p11, %p742_p12 }
  0x5b   : > { %752 = shalt.err (!%p749_p7)
}
  0x5c   : > { %580 = dma.hbm_to_vmem [thread:$0]  (!%p1096_p1), %s1088_s24, 128, %s1090_s28, %s148_s23  }
  0x5d   : > { %167 = sbr.rel (%p1042_p9) target bundleno = 1611 (0x64b), region = 28  ;;  %s1128_s0 = sand.u32 (!%p1042_p9), 1, %s855_s13  }
  0x5e   : > { %s542_s8 = sshll.u32 (!%p1042_p9), %s1128_s0, 3  ;;  %s170_s25 = scalar_lea.sflag (!%p1042_p9), [#allocation6], %s1128_s0 }
  0x5f   : > { %s173_s3 = scalar_lea.vmem (!%p1042_p9), [#allocation5], %s542_s8  ;;  %p1256_p10 = scmp.ne.s32.totalorder (!%p1042_p9), %s1241_s26, 0 }
  0x64   : > { %826 = dma.done.wait (%p1256_p10), %s170_s25, 128  }
  0x65   : > { %828 = vsyncadd (%p1256_p10), %s170_s25, 4294967168  ;;  %s178_s28 = sand.u32 1, %s843_s10   ;;  %p1257_p9 = scmp.ne.s32.totalorder %s1253_s21, 0 }
  0x66   : > { %s543_s24 = sshll.u32 %s178_s28, 3  ;;  %s179_s20 = scalar_lea.sflag [#allocation9], %s178_s28 }
  0x67   : > { %s182_s4 = scalar_lea.vmem [#allocation8], %s543_s24 }
  0x68   : > { %830 = dma.done.wait (%p1257_p9), %s179_s20, 128  }
  0x69   : > { %832 = vsyncadd (%p1257_p9), %s179_s20, 4294967168  ;;  %s1141_s23 = scalar_lea.vmem [#allocation10], %s542_s8  ;;  %p545_p1 = scmp.ne.s32.totalorder %s863_s15, 0 }
  0x6a   : > { %vm212_vm0 = vcmask (!%p545_p1), 7168   ;;  %v883_v0 = vmov (!%p545_p1), -1e+30   ;;  %v884_v1 = vmov (!%p545_p1), 0.0  }
  0x6b   : > { %211 = sbr.rel (%p545_p1) target bundleno = 114 (0x72), region = 40  ;;  %213 = vst.msk [vmem:[#allocation2] sm:$0xff] (!%p545_p1), %vm212_vm0, %v883_v0  ;;  %214 = vst.msk [vmem:[#allocation3] sm:$0xff] (!%p545_p1), %vm212_vm0, %v884_v1 }
  0x6c   : > { %215 = vst.msk [vmem:[#allocation4] sm:$0xff] (!%p545_p1), %vm212_vm0, %v884_v1 }
  0x72 PF: > { %v217_v2 = vld [vmem:[%s182_s4] sm:$0xff]  ;;  %vm218_vm1 = vcmask 261120   ;;  %v885_v3 = vmov 0.0   ;;  %vm886_vm2 = vmmov 0   ;;  %v216_v4 = vld [vmem:[%s173_s3] sm:$0xff]  ;;  %s296_s26 = sadd.s32 1, %s867_s16 }
  0x73   : > { %561 = vmatprep.subr.mxu0 %v885_v3  ;;  %563 = vmatprep.mubr.msk.f32.mxu0 %vm886_vm2, %v885_v3  ;;  %s298_s21 = ssub.s32 0, %s296_s26  ;;  %p297_p8 = scmp.lt.s32.totalorder %s296_s26, 0 }
  0x74   : > { %562 = vmatpush3.xpose.msk.msra.mxu0 %vm218_vm1, %v217_v2  ;;  %s548_s9 = smin.u32 %s298_s21, %s296_s26 }
  0x75   : > { %s300_s6 = sand.u32 1, %s548_s9  }
  0x76   : > { %s301_s30 = ssub.s32 0, %s300_s6 }
  0x77   : > { %564 = vmatmul.mubr.msk.f32.vlgmr.msra.gmra.mrb[0].mxu0 %vm218_vm1, %v216_v4  ;;  %s1279_s30 = smov (!%p297_p8, %s301_s30), %s300_s6 }
  0x78   : > { %p550_p13 = scmp.lt.s32.totalorder %s1279_s30, 0  ;;  %s307_s29 = sadd.s32 2, %s1279_s30 }
  0x7a   : > { %s1281_s29 = smov (!%p550_p13, %s307_s29), %s1279_s30 }
  0x7b   : > { %p551_p0 = scmp.ne.s32.totalorder %s863_s15, %s1281_s29 }
  0x7c   : > { %v313_v8 = vlaneseq (!%p551_p0)  ;;  %vm319_vm3 = vcmask (!%p551_p0), 64512   ;;  %vm323_vm5 = vcmask (!%p551_p0), 7168  }
  0x7e   : > { %v314_v9 = vshrl.u32 (!%p551_p0), %v313_v8, 7  ;;  %v316_v10 = vand.u32 (!%p551_p0), 127, %v313_v8 }
  0x80   : > { %vm317_vm4 = vcmp.eq.s32.totalorder (!%p551_p0), %v314_v9, %v316_v10 }
 0x145   : > { %312 = sbr.rel (%p551_p0) target bundleno = 478 (0x1de), region = 44 }
 0x14a   : > { %v291_v5 = vpop.f32.mrb[0].mxu0 }
 0x14b   : > { %v1145_v6 = vmul.f32 2.0, %v291_v5  ;;  %v565_v7 = vpop.f32.mrb[1].mxu0 }
 0x14d   : > { %v318_v11 = vsel %vm317_vm4, %v1145_v6, 0.0 }
 0x14e   : > { %v320_v12 = vsel %vm319_vm3, %v318_v11, 0.0 }
 0x14f   : > { %321 = vadd.xlane.f32.xlu0 %v320_v12 }
 0x1dc   : > { %v322_v13 = vpop.xlane.xlu0 %321 }
 0x1dd   : > { %324 = vst.msk [vmem:[#allocation4] sm:$0xff] %vm323_vm5, %v322_v13 }
 0x1de PF: > { %p552_p5 = scmp.ne.s32.totalorder %s863_s15, %s867_s16 }
 0x1df   : > { %v329_v14 = vlaneseq (!%p552_p5)  ;;  %vm336_vm6 = vcmask (!%p552_p5), 64512   ;;  %v887_v19 = vmov (!%p552_p5), 0   ;;  %v335_v20 = vld [vmem:[#allocation2] sm:$0xff] (!%p552_p5)  ;;  %vm358_vm8 = vcmask (!%p552_p5), 7168   ;;  %v341_v31 = vld [vmem:[#allocation3] sm:$0xff] (!%p552_p5) }
 0x1e0   : > { %328 = sbr.rel (%p552_p5) target bundleno = 919 (0x397), region = 48  ;;  %681 = vset.pattern.permute.xlu0 (!%p552_p5), %v887_v19 }
 0x1e1   : > { %v330_v15 = vshrl.u32 (!%p552_p5), %v329_v14, 7  ;;  %v332_v16 = vand.u32 (!%p552_p5), 127, %v329_v14 }
 0x1e3   : > { %vm333_vm7 = vcmp.eq.s32.totalorder (!%p552_p5), %v330_v15, %v332_v16 }
 0x1e4   : > { %v334_v17 = vsel (!%p552_p5), %vm333_vm7, -1e+30, %v1145_v6 }
 0x1e5   : > { %v337_v18 = vsel (!%p552_p5), %vm336_vm6, %v334_v17, -inf }
 0x1e6   : > { %338 = vmax.xlane.f32.xlu0 (!%p552_p5), %v337_v18 }
 0x273   : > { %v339_v21 = vpop.xlane.xlu0 %338 }
 0x274   : > { %v340_v22 = vmax.f32 %v335_v20, %v339_v21 }
 0x276   : > { %v342_v23 = vsub.f32 %v335_v20, %v340_v22  ;;  %360 = vst.msk [vmem:[#allocation2] sm:$0xff] %vm358_vm8, %v340_v22  ;;  %348 = vperm.xlu0 %681, %v340_v22  }
 0x278   : > { %v343_v29 = vmul.f32 1.442695, %v342_v23 }
 0x2f5   : > { %v349_v24 = vpop.permute.xlu0 %348 }
 0x2f6   : > { %v351_v25 = vsub.f32 %v334_v17, %v349_v24 }
 0x2f8   : > { %v352_v26 = vmul.f32 1.442695, %v351_v25 }
 0x2fa   : > { %682 = vpow2.f32 %v352_v26 }
 0x2fb   : > { %684 = vpow2.f32 %v343_v29 }
 0x304   : > { %v683_v27 = vpop.eup %682 }
 0x305   : > { %v354_v28 = vsel %vm336_vm6, %v683_v27, 0.0  ;;  %v685_v30 = vpop.eup %684 }
 0x306   : > { %355 = vadd.xlane.f32.xlu1 %v354_v28  ;;  %v345_v32 = vmul.f32 %v685_v30, %v341_v31 }
 0x393   : > { %v356_v33 = vpop.xlane.xlu1 %355 }
 0x394   : > { %v357_v34 = vadd.f32 %v356_v33, %v345_v32 }
 0x396   : > { %359 = vst.msk [vmem:[#allocation3] sm:$0xff] %vm358_vm8, %v357_v34 }
 0x397 PF: > { %p553_p4 = scmp.eq.s32.totalorder %s863_s15, %s867_s16 }
 0x398   : > { %vm366_vm9 = vcmask (!%p553_p4), 64512   ;;  %v888_v36 = vmov (!%p553_p4), 0   ;;  %v365_v37 = vld [vmem:[#allocation2] sm:$0xff] (!%p553_p4)  ;;  %vm388_vm10 = vcmask (!%p553_p4), 7168  }
 0x399   : > { %364 = sbr.rel (%p553_p4) target bundleno = 1355 (0x54b), region = 52  ;;  %v367_v35 = vsel (!%p553_p4), %vm366_vm9, %v1145_v6, -inf  ;;  %686 = vset.pattern.permute.xlu0 (!%p553_p4), %v888_v36 }
 0x39a   : > { %368 = vmax.xlane.f32.xlu0 (!%p553_p4), %v367_v35 }
 0x39d   : > { %v371_v48 = vld [vmem:[#allocation3] sm:$0xff] (!%p553_p4) }
 0x427   : > { %v369_v38 = vpop.xlane.xlu0 %368 }
 0x428   : > { %v370_v39 = vmax.f32 %v365_v37, %v369_v38 }
 0x42a   : > { %v372_v40 = vsub.f32 %v365_v37, %v370_v39  ;;  %390 = vst.msk [vmem:[#allocation2] sm:$0xff] %vm388_vm10, %v370_v39  ;;  %378 = vperm.xlu0 %686, %v370_v39  }
 0x42c   : > { %v373_v46 = vmul.f32 1.442695, %v372_v40 }
 0x4a9   : > { %v379_v41 = vpop.permute.xlu0 %378 }
 0x4aa   : > { %v381_v42 = vsub.f32 %v1145_v6, %v379_v41 }
 0x4ac   : > { %v382_v43 = vmul.f32 1.442695, %v381_v42 }
 0x4ae   : > { %687 = vpow2.f32 %v382_v43 }
 0x4af   : > { %689 = vpow2.f32 %v373_v46 }
 0x4b8   : > { %v688_v44 = vpop.eup %687 }
 0x4b9   : > { %v384_v45 = vsel %vm366_vm9, %v688_v44, 0.0  ;;  %v690_v47 = vpop.eup %689 }
 0x4ba   : > { %385 = vadd.xlane.f32.xlu1 %v384_v45  ;;  %v375_v49 = vmul.f32 %v690_v47, %v371_v48 }
 0x547   : > { %v386_v50 = vpop.xlane.xlu1 %385 }
 0x548   : > { %v387_v51 = vadd.f32 %v386_v50, %v375_v49 }
 0x54a   : > { %389 = vst.msk [vmem:[#allocation3] sm:$0xff] %vm388_vm10, %v387_v51 }
 0x54b PF: > { %p554_p3 = scmp.ne.s32.totalorder %s863_s15, 1 }
 0x54c   : > { %v395_v54 = vld [vmem:[#allocation2] sm:$0xff] (!%p554_p3)  ;;  %v400_v56 = vld [vmem:[#allocation4] sm:$0xff] (!%p554_p3)  ;;  %vm402_vm11 = vcmask (!%p554_p3), 7168  }
 0x54d   : > { %394 = sbr.rel (%p554_p3) target bundleno = 1586 (0x632), region = 56 }
 0x551   : > { %v396_v52 = vld [vmem:[#allocation3] sm:$0xff] (!%p554_p3) }
 0x552   : > { %691 = vlog2.f32 (!%p554_p3), %v396_v52 }
 0x55c   : > { %v692_v53 = vpop.eup %691 }
 0x55d   : > { %v398_v55 = vmul.f32 0.6931472, %v692_v53 }
 0x55f   : > { %v399_v57 = vadd.f32 %v398_v55, %v395_v54 }
 0x561   : > { %v401_v58 = vsub.f32 %v399_v57, %v400_v56 }
 0x563   : > { %v403_v59 = vsel %vm402_vm11, %v401_v58, 0.0 }
 0x564   : > { %404 = vadd.xlane.f32.xlu0 %v403_v59 }
 0x5f1   : > { %v405_v60 = vpop.xlane.xlu0 %404 }
 0x5f2   : > { %v406_v61 = vrot.slane %v405_v60, 4 }
 0x5f4   : > { %v407_v62 = vadd.f32 %v406_v61, %v405_v60 }
 0x5f6   : > { %v408_v63 = vrot.slane %v407_v62, 2 }
 0x5f8   : > { %v409_v0 = vadd.f32 %v408_v63, %v407_v62 }
 0x5fa   : > { %v410_v1 = vrot.slane %v409_v0, 1 }
 0x5fc   : > { %v411_v2 = vadd.f32 %v410_v1, %v409_v0 }
 0x5fe   : > { %566 = vpush %v411_v2 }
 0x62f   : > { %s567_s15 = spop %566 }
 0x630   : > { %v413_v3 = vstv %s567_s15 }
 0x631   : > { %414 = vst [vmem:[%s1141_s23] sm:$0xff] %v413_v3 }
 0x632 PF: > { %s556_s8 = sshll.u32 %s867_s16, 7  ;;  %s429_s24 = sshll.u32 %s1141_s23, 4  ;;  %s430_s24 = int_to_ptr.vmem [resolvable:$true] %s429_s24 }
 0x633   : > { %s1170_s28 = scalar_lea.hbm %s1230_s2, %s556_s8  ;;  %s416_s20 = scalar_lea.sflag [#allocation7], %s1128_s0 }
 0x634   : > { %s753_s4 = scalar_lea.vmem %s430_s24, 128  ;;  %p1258_p12 = scmp.ne.s32.totalorder %s1242_s27, 0 }
 0x635   : > { %p754_p6 = scmp.ne.s32.totalorder %s430_s24, %s753_s4  ;;  %s889_s26 = smov [#allocation10]  }
 0x636   : > { %s757_s21 = sshll.u32 %s889_s26, 4  ;;  %s758_s21 = int_to_ptr.vmem [resolvable:$false] %s757_s21 }
 0x637   : > { %p755_p2 = pnand %p754_p6, %p1258_p12  ;;  %s759_s9 = scalar_lea.vmem %s758_s21, 256 }
 0x638   : > { %p760_p7 = scmp.lt.s32.totalorder %s430_s24, %s758_s21  ;;  %p761_p10 = scmp.lt.s32.totalorder %s759_s9, %s753_s4 }
 0x639   : > { %p756_p11 = pneg %p755_p2 }
 0x63a   : > { %p762_p9 = por %p761_p10, %p760_p7 }
 0x63c   : > { %p763_p1 = pnand %p762_p9, %p756_p11 }
 0x63e   : > { %766 = shalt.err (!%p763_p1)
}
 0x63f   : > { %s767_s16 = scalar_lea.hbm %s1170_s28, 128  ;;  %s771_s6 = scalar_lea.hbm %s1230_s2, 256 }
 0x640   : > { %p768_p8 = scmp.ne.s32.totalorder %s1170_s28, %s767_s16  ;;  %p772_p5 = scmp.lt.u32.totalorder %s1170_s28, %s1230_s2 }
 0x641   : > { %p773_p4 = scmp.lt.u32.totalorder %s771_s6, %s767_s16  ;;  %p775_p6 = scmp.lt.u32.totalorder %s767_s16, %s1170_s28 }
 0x642   : > { %p769_p13 = pnand %p768_p8, %p1258_p12 }
 0x643   : > { %p774_p3 = por %p773_p4, %p772_p5 }
 0x644   : > { %p770_p0 = pneg %p769_p13 }
 0x645   : > { %p776_p2 = por %p775_p6, %p774_p3 }
 0x647   : > { %p777_p11 = pnand %p776_p2, %p770_p0 }
 0x649   : > { %780 = shalt.err (!%p777_p11)
}
 0x64a   : > { %572 = dma.vmem_to_hbm [thread:$0]  (%p1258_p12), %s430_s24, 128, %s1170_s28, %s416_s20  }
 0x64b PF: > { %s1259_s15 = sld [smem:[#allocation14_spill]]  ;;  %p586_p7 = scmp.ge.s32.totalorder %s879_s19, 2 }
 0x64c   : > { %s441_s8 = sand.u32 1, %s851_s12  }
 0x64d   : > { %s442_s25 = scalar_lea.sflag [#allocation7], %s441_s8 }
 0x651   : > { %p1260_p10 = scmp.ne.s32.totalorder %s1259_s15, 0 }
 0x653   : > { %p582_p9 = pnand %p586_p7, %p1260_p10 }
 0x655   : > { %834 = dma.done.wait (!%p582_p9), %s442_s25, 128  }
 0x656   : > { %836 = vsyncadd (!%p582_p9), %s442_s25, 4294967168  ;;  %s21_s19 = sadd.s32 1, %s879_s19   ;;  %s1261_s27 = sld [smem:[#allocation15_spill]] }
 0x657   : > { %p18_p1 = scmp.ge.s32.totalorder %s21_s19, 6   ;;  %s1262_s9 = smov %s843_s10 }
 0x658   : > { %s1263_s10 = smov %s847_s11  ;;  %s1264_s11 = smov %s1075_s7 }
 0x659   : > { %s1265_s12 = smov %s855_s13  ;;  %s1266_s13 = smov %s859_s14 }
 0x65a   : > { %s1267_s14 = smov %s1083_s5  ;;  %s1268_s15 = smov %s871_s17 }
 0x65b   : > { %s1269_s16 = smov %s875_s18  ;;  %s1271_s18 = smov %s1277_s22 }
 0x65c   : > { %s1270_s17 = smov %s1261_s27  ;;  %20 = sbr.rel (!%p18_p1) target bundleno = 13 (0xd), region = 106 }
 0x663   :  { %447 = vsyncpa [#allocation6], 1 }
 0x664   :  { %449 = vsyncpa [#allocation6 + $0x1], 1 }
 0x665   :  { %450 = vsyncpa [#allocation9], 1 }
 0x666   :  { %452 = vsyncpa [#allocation9 + $0x1], 1 }
 0x667   :  { %453 = vsyncpa [#allocation7], 1 }
 0x668   :  { %455 = vsyncpa [#allocation7 + $0x1], 1 }

</bundles_post_ra>
